<compile_context>
chip_gen: v7x
topology: tpu7x:2x2x1
jax: 0.10.0
libtpu: 0.0.40
codegen_flags: <defaults>
</compile_context>

<pallas_src>
import math

import jax
import jax.numpy as jnp
from jax.experimental import pallas as pl
from jax.experimental.pallas import tpu as pltpu


def _encoder_kernel(x_ref, w_ref, pe_ref, o_ref):
    # x_ref:  (TILE_B, TILE_T, D_in)   activation tile, native dtype
    # w_ref:  (D_in, Hp)               projection weight (transposed vs torch)
    # pe_ref: (TILE_T, Hp)             positional encoding with bias folded in
    # o_ref:  (TILE_B, TILE_T, Hp)
    tb, tt, d_in = x_ref.shape
    hp = w_ref.shape[1]
    x2 = x_ref[...].reshape(tb * tt, d_in)  # layout-preserving (TILE_T % 8 == 0)
    y = jnp.dot(x2, w_ref[...], preferred_element_type=jnp.float32)
    y = y.reshape(tb, tt, hp)
    pe = pe_ref[...].astype(jnp.float32)    # add in f32 (no bf16 VPU on v5e)
    o_ref[...] = (y + pe[None, :, :]).astype(o_ref.dtype)


def _round_up(n, m):
    return ((n + m - 1) // m) * m


def time_series_encoder(
    x,
    weight,
    bias,
    pe_table,
    *,
    out_dtype=None,
    target_rows=1024,
    vmem_budget_bytes=28 * 1024 * 1024,
):
    """Fused Linear + positional-encoding add.

    x: (B, T, D_in) in its native dtype (bf16 recommended for HBM-bound perf)
    weight: (H, D_in) torch-style; bias: (H,); pe_table: (max_len, H).
    Output dtype defaults to x.dtype.
    """
    B, T, D_in = x.shape
    H = weight.shape[0]
    max_len = pe_table.shape[0]
    assert T <= max_len, f"sequence length {T} exceeds positional table {max_len}"

    out_dtype = x.dtype if out_dtype is None else jnp.dtype(out_dtype)
    compute_dtype = x.dtype
    Hp = _round_up(H, 128)  # lane-dense output stores

    x_item = jnp.dtype(compute_dtype).itemsize
    out_item = jnp.dtype(out_dtype).itemsize

    def step_bytes(tile_b, tile_t):
        x_tile = tile_b * tile_t * D_in * x_item
        out_tile = tile_b * tile_t * Hp * out_item
        pe_tile = tile_t * Hp * out_item
        w_tile = D_in * Hp * x_item
        return 2 * (x_tile + out_tile + pe_tile + w_tile)  # double-buffered

    # --- TILE_T: ~512 rows along T, cdiv-based so padding waste is minimal ---
    if T <= 512:
        TILE_T = _round_up(T, 8)
    else:
        TILE_T = _round_up(pl.cdiv(T, pl.cdiv(T, 512)), 8)
    # Shrink if even a single-batch step would bust the VMEM budget.
    while TILE_T > 8 and step_bytes(1, TILE_T) > vmem_budget_bytes:
        TILE_T = _round_up(TILE_T // 2, 8)
    T_pad = _round_up(T, TILE_T)
    n_t = T_pad // TILE_T

    # --- TILE_B: batch rows per step up to target_rows, capped by VMEM budget ---
    TILE_B = max(1, min(B, pl.cdiv(target_rows, TILE_T)))
    while TILE_B > 1 and step_bytes(TILE_B, TILE_T) > vmem_budget_bytes:
        TILE_B -= 1
    # Keep >=2 grid steps when possible so both v7x TensorCores get work.
    if B > 1 and n_t * pl.cdiv(B, TILE_B) < 2:
        TILE_B = pl.cdiv(B, 2)
    B_pad = _round_up(B, TILE_B)
    n_b = B_pad // TILE_B

    # --- operand prep (no activation upcast; bias folded into PE once) ---
    w_t = weight.T.astype(compute_dtype)                                   # (D_in, H)
    pe_b = (
        pe_table[:T].astype(jnp.float32) + bias.astype(jnp.float32)[None, :]
    ).astype(out_dtype)                                                    # (T, H)
    if Hp != H:
        w_t = jnp.pad(w_t, ((0, 0), (0, Hp - H)))
        pe_b = jnp.pad(pe_b, ((0, 0), (0, Hp - H)))
    if T_pad != T:
        pe_b = jnp.pad(pe_b, ((0, T_pad - T), (0, 0)))
    x_in = x
    if B_pad != B or T_pad != T:
        x_in = jnp.pad(x, ((0, B_pad - B), (0, T_pad - T), (0, 0)))

    cost = pl.CostEstimate(
        flops=2 * B_pad * T_pad * D_in * Hp,
        transcendentals=0,
        bytes_accessed=(
            x_item * B_pad * T_pad * D_in
            + out_item * B_pad * T_pad * Hp
            + x_item * D_in * Hp
            + out_item * T_pad * Hp
        ),
    )

    out = pl.pallas_call(
        _encoder_kernel,
        out_shape=jax.ShapeDtypeStruct((B_pad, T_pad, Hp), out_dtype),
        grid_spec=pltpu.PrefetchScalarGridSpec(
            num_scalar_prefetch=0,
            # t outer, b inner: W / PE block indices are constant across the
            # inner batch axis, so their tiles are fetched once per t-tile.
            grid=(n_t, n_b),
            in_specs=[
                pl.BlockSpec((TILE_B, TILE_T, D_in), lambda t, b: (b, t, 0)),
                pl.BlockSpec((D_in, Hp), lambda t, b: (0, 0)),
                pl.BlockSpec((TILE_T, Hp), lambda t, b: (t, 0)),
            ],
            out_specs=pl.BlockSpec((TILE_B, TILE_T, Hp), lambda t, b: (b, t, 0)),
        ),
        compiler_params=pltpu.CompilerParams(
            dimension_semantics=("parallel", "parallel"),
            vmem_limit_bytes=48 * 1024 * 1024,
        ),
        cost_estimate=cost,
    )(x_in, w_t, pe_b)

    if B_pad != B or T_pad != T or Hp != H:
        out = out[:B, :T, :H]
    return out


def make_positional_encoding(d_model, max_len=5000):
    """Standard sinusoidal PE table, shape (max_len, d_model)."""
    assert d_model % 2 == 0, "sinusoidal PE requires even d_model"
    position = jnp.arange(max_len, dtype=jnp.float32)[:, None]             # (L, 1)
    div_term = jnp.exp(
        jnp.arange(0, d_model, 2, dtype=jnp.float32)
        * (-math.log(10000.0) / d_model)
    )                                                                      # (d_model/2,)
    pe = jnp.zeros((max_len, d_model), dtype=jnp.float32)
    pe = pe.at[:, 0::2].set(jnp.sin(position * div_term))
    pe = pe.at[:, 1::2].set(jnp.cos(position * div_term))
    return pe


def reference_forward(x, weight, bias, pe_table):
    """Pure-JAX reference mirroring the PyTorch module forward."""
    y = jnp.einsum("btd,hd->bth", x.astype(jnp.float32), weight) + bias
    return y + pe_table[: x.shape[1]][None, :, :]


if __name__ == "__main__":
    # Small shapes consistent with the module: batch=2, seq=8, input=4, hidden=32
    B, T, D_in, H = 2, 8, 4, 32
    max_len = 64

    key = jax.random.PRNGKey(0)
    k_x, k_w, k_b = jax.random.split(key, 3)

    x = jax.random.normal(k_x, (B, T, D_in), dtype=jnp.float32)
    # Deterministic init matching nn.Linear shapes: weight (H, D_in), bias (H,)
    bound = 1.0 / math.sqrt(D_in)
    weight = jax.random.uniform(k_w, (H, D_in), minval=-bound, maxval=bound,
                                dtype=jnp.float32)
    bias = jax.random.uniform(k_b, (H,), minval=-bound, maxval=bound,
                              dtype=jnp.float32)
    pe_table = make_positional_encoding(H, max_len)

    ref = reference_forward(x, weight, bias, pe_table)

    # f32 path: tight numerical check.
    out_f32 = jax.block_until_ready(time_series_encoder(x, weight, bias, pe_table))
    assert out_f32.shape == (B, T, H) and out_f32.dtype == jnp.float32
    assert jnp.allclose(out_f32, ref, atol=1e-5, rtol=1e-5), "f32 mismatch vs reference"

    # bf16 fast path: native activation dtype in, bf16 output stream out.
    x_bf16 = x.astype(jnp.bfloat16)
    out_bf16 = jax.block_until_ready(
        time_series_encoder(x_bf16, weight, bias, pe_table)
    )
    assert out_bf16.shape == (B, T, H) and out_bf16.dtype == jnp.bfloat16
    assert jnp.allclose(out_bf16.astype(jnp.float32), ref, atol=3e-2, rtol=3e-2), (
        "bf16 mismatch vs reference"
    )

    print("KERNEL_OK")
</pallas_src>

<mosaic_0001>
module attributes {stable_mosaic.version = 11 : i64} {
  func.func @_encoder_kernel(%arg0: i32, %arg1: i32, %arg2: memref<1x8x4xf32, #tpu.memory_space<vmem>>, %arg3: memref<4x128xf32, #tpu.memory_space<vmem>>, %arg4: memref<8x128xf32, #tpu.memory_space<vmem>>, %arg5: memref<1x8x128xf32, #tpu.memory_space<vmem>>) attributes {dimension_semantics = [#tpu.dimension_semantics<parallel>, #tpu.dimension_semantics<parallel>], iteration_bounds = array<i64: 1, 2>, scalar_prefetch = 0 : i64, scratch_operands = 0 : i64, tpu.core_type = #tpu.core_type<tc>, window_params = [{transform_indices = @transform_0, window_bounds = array<i64: 1, 8, 4>}, {pipeline_mode = #tpu.pipeline_mode<synchronous>, transform_indices = @transform_1, window_bounds = array<i64: 4, 128>}, {transform_indices = @transform_2, window_bounds = array<i64: 8, 128>}, {transform_indices = @transform_3, window_bounds = array<i64: 1, 8, 128>}]} {
    %c0 = arith.constant 0 : index
    %c0_0 = arith.constant 0 : index
    %c0_1 = arith.constant 0 : index
    %0 = vector.load %arg2[%c0, %c0_0, %c0_1] : memref<1x8x4xf32, #tpu.memory_space<vmem>>, vector<1x8x4xf32>
    %1 = vector.shape_cast %0 : vector<1x8x4xf32> to vector<8x4xf32>
    %c0_2 = arith.constant 0 : index
    %c0_3 = arith.constant 0 : index
    %2 = vector.load %arg3[%c0_2, %c0_3] : memref<4x128xf32, #tpu.memory_space<vmem>>, vector<4x128xf32>
    %cst = arith.constant dense<0.000000e+00> : vector<8x128xf32>
    %3 = tpu.matmul %1, %2, %cst {dimension_numbers = #tpu.dot_dimension_numbers<[1], [0], [0], [1], [0, 0, 1, 1], [], []>} : vector<8x4xf32>, vector<4x128xf32>, vector<8x128xf32> -> vector<8x128xf32>
    %4 = vector.shape_cast %3 : vector<8x128xf32> to vector<1x8x128xf32>
    %c0_4 = arith.constant 0 : index
    %c0_5 = arith.constant 0 : index
    %5 = vector.load %arg4[%c0_4, %c0_5] : memref<8x128xf32, #tpu.memory_space<vmem>>, vector<8x128xf32>
    %6 = vector.shape_cast %5 : vector<8x128xf32> to vector<1x8x128xf32>
    %7 = arith.addf %4, %6 : vector<1x8x128xf32>
    %c0_6 = arith.constant 0 : index
    %c0_7 = arith.constant 0 : index
    %c0_8 = arith.constant 0 : index
    %8 = vector.load %arg5[%c0_6, %c0_7, %c0_8] : memref<1x8x128xf32, #tpu.memory_space<vmem>>, vector<1x8x128xf32>
    tpu.vector_store %arg5[%c0_6, %c0_7, %c0_8], %7 {strides = array<i32>} : memref<1x8x128xf32, #tpu.memory_space<vmem>>, vector<1x8x128xf32>,
    return
  }
  func.func @transform_0(%arg0: i32, %arg1: i32) -> (i32, i32, i32) {
    %c0_i32 = arith.constant 0 : i32
    %c0_i32_0 = arith.constant 0 : i32
    return %arg1, %arg0, %c0_i32 : i32, i32, i32
  }
  func.func @transform_1(%arg0: i32, %arg1: i32) -> (i32, i32) {
    %c0_i32 = arith.constant 0 : i32
    %c0_i32_0 = arith.constant 0 : i32
    %c0_i32_1 = arith.constant 0 : i32
    return %c0_i32, %c0_i32_0 : i32, i32
  }
  func.func @transform_2(%arg0: i32, %arg1: i32) -> (i32, i32) {
    %c0_i32 = arith.constant 0 : i32
    %c0_i32_0 = arith.constant 0 : i32
    return %arg0, %c0_i32 : i32, i32
  }
  func.func @transform_3(%arg0: i32, %arg1: i32) -> (i32, i32, i32) {
    %c0_i32 = arith.constant 0 : i32
    %c0_i32_0 = arith.constant 0 : i32
    return %arg1, %arg0, %c0_i32 : i32, i32, i32
  }
}

</mosaic_0001>

<bundles_post_ra>
// kernel: tpu_custom_call.1
= control target key start
LH: loop header
LB: loop body
LE: loop exit
PB: predicated region body
PF: predicated region fallthrough
CT: control target
= control target key end

     0   :  { %8 = vsyncpa [#allocation3], 0  ;;  %s691_s0 = inlined_call_operand.vmem [shape: f32[2,8,4], index: 0, kind: input, shape index: {}]   ;;  %s692_s1 = inlined_call_operand.vmem [shape: f32[4,128], index: 1, kind: input, shape index: {}]   ;;  %s693_s2 = inlined_call_operand.vmem [shape: f32[8,128], index: 2, kind: input, shape index: {}]   ;;  %s694_s3 = inlined_call_operand.hbm [shape: f32[2,8,128], index: 3, kind: output, shape index: {}]  }
   0x1   :  { %10 = vsyncpa [#allocation3 + $0x1], 0  ;;  %s573_s12 = smov 0   ;;  %s575_s13 = smov 0  }
   0x2   :  { %s577_s14 = smov 0   ;;  %s579_s15 = smov 0  }
   0x3   :  { %s581_s16 = smov 0   ;;  %s583_s17 = smov 0  }
   0x4 LB: > { %s392_s18 = sadd.s32 4294967295, %s548_s17   ;;  %s393_s19 = sadd.s32 4294967294, %s548_s17   ;;  %s548_s17 = sphi %s583_s17, %s16_s17   ;;  %s544_s16 = sphi %s581_s16, %s701_s16   ;;  %s540_s15 = sphi %s579_s15, %s700_s15   ;;  %s536_s14 = sphi %s577_s14, %s699_s14   ;;  %s532_s13 = sphi %s575_s13, %s698_s13   ;;  %s528_s12 = sphi %s573_s12, %s697_s12  }
   0x5   : > { %s25_s20 = sadd.s32 1, %s544_s16  ;;  %s112_s21 = sadd.s32 1, %s536_s14 }
   0x6   : > { %p26_p0 = scmp.ge.s32.totalorder %s25_s20, 2  ;;  %p122_p1 = scmp.ne.s32.totalorder %s536_s14, %s532_s13 }
   0x7   : > { %p123_p2 = scmp.eq.s32.totalorder %s392_s18, 1  ;;  %p128_p3 = scmp.ne.s32.totalorder %s532_s13, %s528_s12 }
   0x8   : > { %s703_s20 = smov (%p26_p0, %s25_s20), 0  ;;  %p129_p5 = scmp.eq.s32.totalorder %s393_s19, 1 }
   0x9   : > { %p613_p4 = por %p123_p2, %p122_p1  ;;  %s107_s23 = ssub.s32 %s544_s16, %s703_s20 }
   0xa   : > { %p397_p6 = scmp.ge.s32.totalorder %s548_s17, 1  ;;  %p110_p7 = scmp.eq.s32.totalorder %s107_s23, 0 }
   0xb   : > { %p620_p8 = por %p129_p5, %p128_p3  ;;  %p167_p9 = scmp.lt.s32.totalorder %s548_s17, 3 }
   0xc   : > { %s626_s25 = scalar_select %p110_p7, %s536_s14, %s112_s21  }
   0xd   : > { %p168_p10 = pnand %p397_p6, %p167_p9 }
   0xe   : > { %v209_v0 = vld [vmem:[%s692_s1] sm:$0xf] (!%p168_p10)  ;;  %vm214_vm0 = vcmask (!%p168_p10), 1043456   ;;  %p197_p11 = scmp.lt.s32.totalorder (!%p168_p10), %s540_s15, 1  ;;  %v550_v1 = vmov (!%p168_p10), 0.0   ;;  %vm551_vm1 = vmmov (!%p168_p10), 0  }
   0xf   : > { %171 = sbr.rel (%p168_p10) target bundleno = 255 (0xff), region = 32  ;;  %408 = vmatprep.subr.mxu0 (!%p168_p10), %v550_v1  ;;  %410 = vmatprep.mubr.msk.f32.mxu0 (!%p168_p10), %vm551_vm1, %v550_v1  ;;  %vm210_vm2 = vcmask (!%p168_p10), 31744   ;;  %s194_s6 = sand.u32 (!%p168_p10), 1, %s532_s13   ;;  %v288_v3 = vld [vmem:[%s693_s2] sm:$0xff] (!%p168_p10) }
  0x10   : > { %409 = vmatpush3.msk.msra.mxu0 (!%p168_p10), %vm214_vm0, %v209_v0  ;;  %s398_s7 = sshll.u32 (!%p168_p10), %s194_s6, 3  ;;  %s403_s10 = sshll.u32 (!%p168_p10), %s540_s15, 7 }
  0x11   : > { %s196_s11 = scalar_lea.vmem (!%p168_p10), [#allocation2], %s398_s7  ;;  %s644_s23 = scalar_lea.hbm (!%p168_p10), %s694_s3, %s403_s10 }
  0x12   : > { %s306_s18 = sshll.u32 (!%p168_p10), %s196_s11, 4  ;;  %s292_s26 = scalar_lea.sflag (!%p168_p10), [#allocation3], %s194_s6  ;;  %s646_s18 = int_to_ptr.vmem [resolvable:$true] %s306_s18 }
  0x13   : > { %s470_s27 = scalar_lea.vmem (!%p168_p10), %s646_s18, 128 }
  0x14   : > { %p471_p12 = scmp.ne.s32.totalorder (!%p168_p10), %s646_s18, %s470_s27 }
  0x16   : > { %s198_s28 = scalar_select %p197_p11, %s540_s15, 1 }
  0x17   : > { %p472_p13 = pnand %p471_p12, %p613_p4  ;;  %s552_s15 = smov [#allocation2]  }
  0x18   : > { %s399_s29 = sshll.u32 %s198_s28, 3  ;;  %s474_s28 = sshll.u32 %s552_s15, 4  ;;  %s475_s28 = int_to_ptr.vmem [resolvable:$false] %s474_s28 }
  0x19   : > { %s203_s5 = scalar_lea.vmem %s691_s0, %s399_s29  ;;  %p473_p0 = pneg %p472_p13 }
  0x1a   : > { %v208_v2 = vld [vmem:[%s203_s5] sm:$0xff]  ;;  %s476_s29 = scalar_lea.vmem %s475_s28, 256  ;;  %p477_p1 = scmp.lt.s32.totalorder %s646_s18, %s475_s28 }
  0x1b   : > { %411 = vmatmul.mubr.msk.f32.vlgmr.msra.gmra.mrb[0].mxu0 %vm210_vm2, %v208_v2  ;;  %p478_p2 = scmp.lt.s32.totalorder %s476_s29, %s470_s27 }
  0x1d   : > { %p479_p3 = por %p478_p2, %p477_p1 }
  0x1f   : > { %p480_p5 = pnand %p479_p3, %p473_p0 }
  0xee   : > { %v284_v4 = vpop.f32.mrb[0].mxu0 }
  0xef   : > { %v289_v5 = vadd.f32 %v288_v3, %v284_v4  ;;  %v412_v6 = vpop.f32.mrb[1].mxu0 }
  0xf1   : > { %290 = vst [vmem:[%s196_s11] sm:$0xff] %v289_v5 }
  0xf2   : > { %483 = shalt.err (!%p480_p5)
}
  0xf3   : > { %s484_s30 = scalar_lea.hbm %s644_s23, 128  ;;  %s488_s6 = scalar_lea.hbm %s694_s3, 256 }
  0xf4   : > { %p485_p6 = scmp.ne.s32.totalorder %s644_s23, %s484_s30  ;;  %p489_p10 = scmp.lt.u32.totalorder %s644_s23, %s694_s3 }
  0xf5   : > { %p490_p11 = scmp.lt.u32.totalorder %s488_s6, %s484_s30  ;;  %p492_p13 = scmp.lt.u32.totalorder %s484_s30, %s644_s23 }
  0xf6   : > { %p486_p7 = pnand %p485_p6, %p613_p4 }
  0xf7   : > { %p491_p12 = por %p490_p11, %p489_p10 }
  0xf8   : > { %p487_p9 = pneg %p486_p7 }
  0xf9   : > { %p493_p0 = por %p492_p13, %p491_p12 }
  0xfb   : > { %p494_p1 = pnand %p493_p0, %p487_p9 }
  0xfd   : > { %497 = shalt.err (!%p494_p1)
}
  0xfe   : > { %413 = dma.vmem_to_hbm [thread:$0]  (%p613_p4), %s646_s18, 128, %s644_s23, %s292_s26  }
  0xff PF: > { %p419_p2 = scmp.ge.s32.totalorder %s548_s17, 2  ;;  %s318_s9 = sand.u32 1, %s528_s12  }
 0x100   : > { %s319_s10 = scalar_lea.sflag [#allocation3], %s318_s9 }
 0x101   : > { %p416_p3 = pnand %p419_p2, %p620_p8 }
 0x103   : > { %523 = dma.done.wait (!%p416_p3), %s319_s10, 128  }
 0x104   : > { %525 = vsyncadd (!%p416_p3), %s319_s10, 4294967168  ;;  %s16_s17 = sadd.s32 1, %s548_s17   ;;  %s697_s12 = smov %s532_s13 }
 0x105   : > { %p13_p5 = scmp.ge.s32.totalorder %s16_s17, 4   ;;  %s698_s13 = smov %s536_s14 }
 0x106   : > { %s699_s14 = smov %s626_s25  ;;  %s700_s15 = smov %s544_s16 }
 0x107   : > { %s701_s16 = smov %s703_s20  ;;  %15 = sbr.rel (!%p13_p5) target bundleno = 4 (0x4), region = 70 }
 0x10e   :  { %324 = vsyncpa [#allocation3], 1 }
 0x10f   :  { %326 = vsyncpa [#allocation3 + $0x1], 1 }

</bundles_post_ra>
